<compile_context>
chip_gen: v6e
topology: v6e:2x2x1
jax: 0.10.0
libtpu: 0.0.40
codegen_flags: <defaults>
</compile_context>

<pallas_src>
import jax
import jax.numpy as jnp
from jax.experimental import pallas as pl
from jax.experimental.pallas import tpu as pltpu


FC1 = 256
FC2 = 256
OUT_LANES = 128     # lane-dense output slab; q lives in column 0
MAX_TB = 256        # batch tile (well inside v7x's 64 MiB VMEM budget)


def _round_up(n, m):
    return ((n + m - 1) // m) * m


# ----------------------------------------------------------------------------
# Pallas kernel: fused fc1 -> relu -> fc2 -> relu -> q  for one batch tile
# ----------------------------------------------------------------------------
def critic_kernel(s_ref, a_ref, w1s_ref, w1a_ref, b1_ref,
                  w2_ref, b2_ref, wq_ref, bq_ref, q_ref):
    # s_ref  : [TB, Ds]  bf16     a_ref : [TB, Da]  bf16
    # w1s    : [Ds, F1]  bf16     w1a   : [Da, F1]  bf16    b1 : [1, F1] f32
    # w2     : [F1, F2]  bf16     b2    : [1, F2]   f32
    # wq     : [1, F2]   f32      bq    : [1, 1]    f32
    # q_ref  : [TB, 128] f32  (column 0 is the real q; lane-dense unmasked store)

    # fc1: split-weight matmul replaces cat([state, action], 1) @ w1
    h1 = (jnp.dot(s_ref[...], w1s_ref[...], preferred_element_type=jnp.float32)
          + jnp.dot(a_ref[...], w1a_ref[...], preferred_element_type=jnp.float32)
          + b1_ref[...])
    h1 = jnp.maximum(h1, 0.0)

    # fc2
    h2 = jnp.dot(h1.astype(jnp.bfloat16), w2_ref[...],
                 preferred_element_type=jnp.float32) + b2_ref[...]
    h2 = jnp.maximum(h2, 0.0)

    # q head: VPU multiply + lane reduce (avoids a degenerate [256,1] MXU matmul)
    q = jnp.sum(h2 * wq_ref[...], axis=-1, keepdims=True) + bq_ref[...]   # [TB, 1]

    # lane-dense store; wrapper slices column 0
    q_ref[...] = jnp.broadcast_to(q, q_ref.shape).astype(q_ref.dtype)


# ----------------------------------------------------------------------------
# Wrapper
# ----------------------------------------------------------------------------
@jax.jit
def critic_forward(state, action, kparams):
    """state: [B, input_dims] f32, action: [B, n_actions] f32 -> q: [B, 1] f32."""
    B, d_s = state.shape
    _, d_a = action.shape
    ds = kparams["w1_s"].shape[0]   # padded state fan-in
    da = kparams["w1_a"].shape[0]   # padded action fan-in

    # batch tiling (pad B to a multiple of the tile; extra rows sliced off)
    tb = min(MAX_TB, _round_up(B, 8))
    b_pad = _round_up(B, tb)
    grid = (b_pad // tb,)

    # zero-pad batch and fan-in, cast activations to bf16 (halves x DMA bytes)
    s = jnp.zeros((b_pad, ds), jnp.bfloat16).at[:B, :d_s].set(
        state.astype(jnp.bfloat16))
    a = jnp.zeros((b_pad, da), jnp.bfloat16).at[:B, :d_a].set(
        action.astype(jnp.bfloat16))

    full = lambda arr: pl.BlockSpec(arr.shape, lambda i: (0,) * arr.ndim)

    flops = 2 * b_pad * (ds * FC1 + da * FC1 + FC1 * FC2 + FC2)
    bytes_accessed = (
        s.size * 2 + a.size * 2                                    # bf16 activations
        + (kparams["w1_s"].size + kparams["w1_a"].size
           + kparams["w2"].size) * 2                               # bf16 weights
        + (kparams["b1"].size + kparams["b2"].size
           + kparams["wq_row"].size + kparams["bq"].size) * 4      # f32 biases
        + b_pad * OUT_LANES * 4                                    # f32 output slab
    )

    q_pad = pl.pallas_call(
        critic_kernel,
        out_shape=jax.ShapeDtypeStruct((b_pad, OUT_LANES), jnp.float32),
        grid=grid,
        in_specs=[
            pl.BlockSpec((tb, ds), lambda i: (i, 0)),
            pl.BlockSpec((tb, da), lambda i: (i, 0)),
            full(kparams["w1_s"]),
            full(kparams["w1_a"]),
            full(kparams["b1"]),
            full(kparams["w2"]),
            full(kparams["b2"]),
            full(kparams["wq_row"]),
            full(kparams["bq"]),
        ],
        out_specs=pl.BlockSpec((tb, OUT_LANES), lambda i: (i, 0)),
        compiler_params=pltpu.CompilerParams(
            dimension_semantics=("parallel",)),
        cost_estimate=pl.CostEstimate(
            flops=flops, transcendentals=0, bytes_accessed=bytes_accessed),
    )(s, a, kparams["w1_s"], kparams["w1_a"], kparams["b1"],
      kparams["w2"], kparams["b2"], kparams["wq_row"], kparams["bq"])

    return q_pad[:B, :1]


# ----------------------------------------------------------------------------
# Parameter init (matches nn.Linear defaults + q-layer uniform(0, init_w))
# ----------------------------------------------------------------------------
def init_params(key, input_dims, n_actions, fc1_dims=FC1, fc2_dims=FC2,
                init_w=0.003):
    d_in = input_dims + n_actions
    k1, k2, k3, k4, k5, k6 = jax.random.split(key, 6)

    def linear_init(kw, kb, fan_in, fan_out):
        bound = 1.0 / jnp.sqrt(fan_in)
        # stored as [in, out] (transposed vs. PyTorch's [out, in])
        w = jax.random.uniform(kw, (fan_in, fan_out), jnp.float32, -bound, bound)
        b = jax.random.uniform(kb, (1, fan_out), jnp.float32, -bound, bound)
        return w, b

    w1, b1 = linear_init(k1, k2, d_in, fc1_dims)
    w2, b2 = linear_init(k3, k4, fc1_dims, fc2_dims)
    wq = jax.random.uniform(k5, (fc2_dims, 1), jnp.float32, 0.0, init_w)
    bq = jax.random.uniform(k6, (1, 1), jnp.float32, 0.0, init_w)
    return {"w1": w1, "b1": b1, "w2": w2, "b2": b2, "wq": wq, "bq": bq}


def prepare_params(params, input_dims, n_actions):
    """Split/pad w1, cast matmul weights to bf16, make wq lane-dense [1, F2]."""
    ds = _round_up(input_dims, 8)
    da = _round_up(n_actions, 8)
    w1 = params["w1"]
    w1_s = jnp.zeros((ds, FC1), jnp.float32).at[:input_dims].set(w1[:input_dims])
    w1_a = jnp.zeros((da, FC1), jnp.float32).at[:n_actions].set(w1[input_dims:])
    return {
        "w1_s": w1_s.astype(jnp.bfloat16),
        "w1_a": w1_a.astype(jnp.bfloat16),
        "b1": params["b1"].astype(jnp.float32),
        "w2": params["w2"].astype(jnp.bfloat16),
        "b2": params["b2"].astype(jnp.float32),
        "wq_row": params["wq"].reshape(1, FC2).astype(jnp.float32),
        "bq": params["bq"].astype(jnp.float32),
    }


def reference_forward(state, action, params):
    x = jnp.concatenate([state, action], axis=1)
    h1 = jnp.maximum(x @ params["w1"] + params["b1"], 0.0)
    h2 = jnp.maximum(h1 @ params["w2"] + params["b2"], 0.0)
    return h2 @ params["wq"] + params["bq"]


if __name__ == "__main__":
    key = jax.random.PRNGKey(0)
    k_param, k_state, k_action = jax.random.split(key, 3)

    batch = 2
    input_dims = 8
    n_actions = 4

    params = init_params(k_param, input_dims, n_actions)
    kparams = prepare_params(params, input_dims, n_actions)

    state = jax.random.normal(k_state, (batch, input_dims), jnp.float32)
    action = jax.random.normal(k_action, (batch, n_actions), jnp.float32)

    q = critic_forward(state, action, kparams)
    q = jax.block_until_ready(q)

    q_ref = reference_forward(state, action, params)   # full-f32 reference
    assert q.shape == (batch, 1), q.shape
    # bf16 MXU weights -> loose-ish tolerance vs. the f32 reference
    assert jnp.allclose(q, q_ref, atol=2e-2, rtol=2e-2), (q, q_ref)

    print("KERNEL_OK")
</pallas_src>

<mosaic_0001>
module attributes {stable_mosaic.version = 11 : i64} {
  func.func @critic_kernel(%arg0: i32, %arg1: memref<8x8xbf16, #tpu.memory_space<vmem>>, %arg2: memref<8x8xbf16, #tpu.memory_space<vmem>>, %arg3: memref<8x256xbf16, #tpu.memory_space<vmem>>, %arg4: memref<8x256xbf16, #tpu.memory_space<vmem>>, %arg5: memref<1x256xf32, #tpu.memory_space<vmem>>, %arg6: memref<256x256xbf16, #tpu.memory_space<vmem>>, %arg7: memref<1x256xf32, #tpu.memory_space<vmem>>, %arg8: memref<1x256xf32, #tpu.memory_space<vmem>>, %arg9: memref<1x1xf32, #tpu.memory_space<vmem>>, %arg10: memref<8x128xf32, #tpu.memory_space<vmem>>) attributes {dimension_semantics = [#tpu.dimension_semantics<parallel>], iteration_bounds = array<i64: 1>, scalar_prefetch = 0 : i64, scratch_operands = 0 : i64, tpu.core_type = #tpu.core_type<tc>, window_params = [{transform_indices = @transform_0, window_bounds = array<i64: 8, 8>}, {transform_indices = @transform_1, window_bounds = array<i64: 8, 8>}, {pipeline_mode = #tpu.pipeline_mode<synchronous>, transform_indices = @transform_2, window_bounds = array<i64: 8, 256>}, {pipeline_mode = #tpu.pipeline_mode<synchronous>, transform_indices = @transform_3, window_bounds = array<i64: 8, 256>}, {pipeline_mode = #tpu.pipeline_mode<synchronous>, transform_indices = @transform_4, window_bounds = array<i64: 1, 256>}, {pipeline_mode = #tpu.pipeline_mode<synchronous>, transform_indices = @transform_5, window_bounds = array<i64: 256, 256>}, {pipeline_mode = #tpu.pipeline_mode<synchronous>, transform_indices = @transform_6, window_bounds = array<i64: 1, 256>}, {pipeline_mode = #tpu.pipeline_mode<synchronous>, transform_indices = @transform_7, window_bounds = array<i64: 1, 256>}, {pipeline_mode = #tpu.pipeline_mode<synchronous>, transform_indices = @transform_8, window_bounds = array<i64: 1, 1>}, {transform_indices = @transform_9, window_bounds = array<i64: 8, 128>}]} {
    %c0 = arith.constant 0 : index
    %c0_0 = arith.constant 0 : index
    %0 = vector.load %arg1[%c0, %c0_0] : memref<8x8xbf16, #tpu.memory_space<vmem>>, vector<8x8xbf16>
    %c0_1 = arith.constant 0 : index
    %c0_2 = arith.constant 0 : index
    %1 = vector.load %arg3[%c0_1, %c0_2] : memref<8x256xbf16, #tpu.memory_space<vmem>>, vector<8x256xbf16>
    %cst = arith.constant dense<0.000000e+00> : vector<8x256xf32>
    %2 = tpu.matmul %0, %1, %cst {dimension_numbers = #tpu.dot_dimension_numbers<[1], [0], [0], [1], [0, 0, 1, 1], [], []>} : vector<8x8xbf16>, vector<8x256xbf16>, vector<8x256xf32> -> vector<8x256xf32>
    %c0_3 = arith.constant 0 : index
    %c0_4 = arith.constant 0 : index
    %3 = vector.load %arg2[%c0_3, %c0_4] : memref<8x8xbf16, #tpu.memory_space<vmem>>, vector<8x8xbf16>
    %c0_5 = arith.constant 0 : index
    %c0_6 = arith.constant 0 : index
    %4 = vector.load %arg4[%c0_5, %c0_6] : memref<8x256xbf16, #tpu.memory_space<vmem>>, vector<8x256xbf16>
    %cst_7 = arith.constant dense<0.000000e+00> : vector<8x256xf32>
    %5 = tpu.matmul %3, %4, %cst_7 {dimension_numbers = #tpu.dot_dimension_numbers<[1], [0], [0], [1], [0, 0, 1, 1], [], []>} : vector<8x8xbf16>, vector<8x256xbf16>, vector<8x256xf32> -> vector<8x256xf32>
    %6 = arith.addf %2, %5 : vector<8x256xf32>
    %c0_8 = arith.constant 0 : index
    %c0_9 = arith.constant 0 : index
    %7 = vector.load %arg5[%c0_8, %c0_9] : memref<1x256xf32, #tpu.memory_space<vmem>>, vector<1x256xf32>
    %8 = vector.broadcast %7 : vector<1x256xf32> to vector<8x256xf32>
    %9 = arith.addf %6, %8 : vector<8x256xf32>
    %cst_10 = arith.constant 0.000000e+00 : f32
    %10 = vector.broadcast %cst_10 : f32 to vector<8x256xf32>
    %11 = arith.maximumf %9, %10 : vector<8x256xf32>
    %12 = arith.truncf %11 : vector<8x256xf32> to vector<8x256xbf16>
    %c0_11 = arith.constant 0 : index
    %c0_12 = arith.constant 0 : index
    %13 = vector.load %arg6[%c0_11, %c0_12] : memref<256x256xbf16, #tpu.memory_space<vmem>>, vector<256x256xbf16>
    %cst_13 = arith.constant dense<0.000000e+00> : vector<8x256xf32>
    %14 = tpu.matmul %12, %13, %cst_13 {dimension_numbers = #tpu.dot_dimension_numbers<[1], [0], [0], [1], [0, 0, 1, 1], [], []>} : vector<8x256xbf16>, vector<256x256xbf16>, vector<8x256xf32> -> vector<8x256xf32>
    %c0_14 = arith.constant 0 : index
    %c0_15 = arith.constant 0 : index
    %15 = vector.load %arg7[%c0_14, %c0_15] : memref<1x256xf32, #tpu.memory_space<vmem>>, vector<1x256xf32>
    %16 = vector.broadcast %15 : vector<1x256xf32> to vector<8x256xf32>
    %17 = arith.addf %14, %16 : vector<8x256xf32>
    %cst_16 = arith.constant 0.000000e+00 : f32
    %18 = vector.broadcast %cst_16 : f32 to vector<8x256xf32>
    %19 = arith.maximumf %17, %18 : vector<8x256xf32>
    %c0_17 = arith.constant 0 : index
    %c0_18 = arith.constant 0 : index
    %20 = vector.load %arg8[%c0_17, %c0_18] : memref<1x256xf32, #tpu.memory_space<vmem>>, vector<1x256xf32>
    %21 = vector.broadcast %20 : vector<1x256xf32> to vector<8x256xf32>
    %22 = arith.mulf %19, %21 : vector<8x256xf32>
    %cst_19 = arith.constant dense<0.000000e+00> : vector<8xf32>
    %23 = vector.multi_reduction <add>, %22, %cst_19 [1] : vector<8x256xf32> to vector<8xf32>
    %24 = vector.shape_cast %23 : vector<8xf32> to vector<8x1xf32>
    %c0_20 = arith.constant 0 : index
    %c0_21 = arith.constant 0 : index
    %25 = vector.load %arg9[%c0_20, %c0_21] : memref<1x1xf32, #tpu.memory_space<vmem>>, vector<1x1xf32>
    %26 = vector.broadcast %25 : vector<1x1xf32> to vector<8x1xf32>
    %27 = arith.addf %24, %26 : vector<8x1xf32>
    %28 = vector.shape_cast %27 : vector<8x1xf32> to vector<8x1xf32>
    %29 = vector.broadcast %28 : vector<8x1xf32> to vector<8x128xf32>
    %c0_22 = arith.constant 0 : index
    %c0_23 = arith.constant 0 : index
    %30 = vector.load %arg10[%c0_22, %c0_23] : memref<8x128xf32, #tpu.memory_space<vmem>>, vector<8x128xf32>
    tpu.vector_store %arg10[%c0_22, %c0_23], %29 {strides = array<i32>} : memref<8x128xf32, #tpu.memory_space<vmem>>, vector<8x128xf32>,
    return
  }
  func.func @transform_0(%arg0: i32) -> (i32, i32) {
    %c0_i32 = arith.constant 0 : i32
    %c0_i32_0 = arith.constant 0 : i32
    return %arg0, %c0_i32 : i32, i32
  }
  func.func @transform_1(%arg0: i32) -> (i32, i32) {
    %c0_i32 = arith.constant 0 : i32
    %c0_i32_0 = arith.constant 0 : i32
    return %arg0, %c0_i32 : i32, i32
  }
  func.func @transform_2(%arg0: i32) -> (i32, i32) {
    %c0_i32 = arith.constant 0 : i32
    %c0_i32_0 = arith.constant 0 : i32
    %c0_i32_1 = arith.constant 0 : i32
    return %c0_i32, %c0_i32_0 : i32, i32
  }
  func.func @transform_3(%arg0: i32) -> (i32, i32) {
    %c0_i32 = arith.constant 0 : i32
    %c0_i32_0 = arith.constant 0 : i32
    %c0_i32_1 = arith.constant 0 : i32
    return %c0_i32, %c0_i32_0 : i32, i32
  }
  func.func @transform_4(%arg0: i32) -> (i32, i32) {
    %c0_i32 = arith.constant 0 : i32
    %c0_i32_0 = arith.constant 0 : i32
    %c0_i32_1 = arith.constant 0 : i32
    return %c0_i32, %c0_i32_0 : i32, i32
  }
  func.func @transform_5(%arg0: i32) -> (i32, i32) {
    %c0_i32 = arith.constant 0 : i32
    %c0_i32_0 = arith.constant 0 : i32
    %c0_i32_1 = arith.constant 0 : i32
    return %c0_i32, %c0_i32_0 : i32, i32
  }
  func.func @transform_6(%arg0: i32) -> (i32, i32) {
    %c0_i32 = arith.constant 0 : i32
    %c0_i32_0 = arith.constant 0 : i32
    %c0_i32_1 = arith.constant 0 : i32
    return %c0_i32, %c0_i32_0 : i32, i32
  }
  func.func @transform_7(%arg0: i32) -> (i32, i32) {
    %c0_i32 = arith.constant 0 : i32
    %c0_i32_0 = arith.constant 0 : i32
    %c0_i32_1 = arith.constant 0 : i32
    return %c0_i32, %c0_i32_0 : i32, i32
  }
  func.func @transform_8(%arg0: i32) -> (i32, i32) {
    %c0_i32 = arith.constant 0 : i32
    %c0_i32_0 = arith.constant 0 : i32
    %c0_i32_1 = arith.constant 0 : i32
    return %c0_i32, %c0_i32_0 : i32, i32
  }
  func.func @transform_9(%arg0: i32) -> (i32, i32) {
    %c0_i32 = arith.constant 0 : i32
    %c0_i32_0 = arith.constant 0 : i32
    return %arg0, %c0_i32 : i32, i32
  }
}

</mosaic_0001>

<bundles_post_ra>
// kernel: critic_forward.1
= control target key start
LH: loop header
LB: loop body
LE: loop exit
PB: predicated region body
PF: predicated region fallthrough
CT: control target
= control target key end

     0   :  { %s676_s0 = inlined_call_operand.vmem [shape: bf16[8,8], index: 0, kind: input, shape index: {}]   ;;  %s677_s1 = inlined_call_operand.vmem [shape: bf16[8,8], index: 1, kind: input, shape index: {}]   ;;  %s678_s2 = inlined_call_operand.vmem [shape: bf16[8,256], index: 2, kind: input, shape index: {}]   ;;  %s679_s3 = inlined_call_operand.vmem [shape: bf16[8,256], index: 3, kind: input, shape index: {}]   ;;  %s680_s4 = inlined_call_operand.vmem [shape: f32[1,256], index: 4, kind: input, shape index: {}]   ;;  %s681_s5 = inlined_call_operand.hbm [shape: bf16[256,256], index: 5, kind: input, shape index: {}]   ;;  %s682_s6 = inlined_call_operand.vmem [shape: f32[1,256], index: 6, kind: input, shape index: {}]   ;;  %s683_s7 = inlined_call_operand.vmem [shape: f32[1,256], index: 7, kind: input, shape index: {}]   ;;  %s684_s8 = inlined_call_operand.<no memory space> [shape: f32[1,1], index: 8, kind: input, shape index: {}]   ;;  %s685_s9 = inlined_call_operand.vmem [shape: f32[8,128], index: 9, kind: output, shape index: {}]  }
   0x1   :  { %v14_v0 = vstv %s684_s8 }
   0x2   :  { %15 = vst [vmem:[#allocation2] sm:$0x1] %v14_v0 }
   0x3   :  { %16 = vsyncpa [#allocation4], 0  ;;  %s586_s11 = smov [#allocation3]  }
   0x4   :  { %s32_s12 = sshll.u32 %s586_s11, 4  ;;  %s33_s12 = int_to_ptr.vmem [resolvable:$true] %s32_s12 }
   0x5   :  { %s572_s13 = scalar_lea.vmem %s33_s12, 4096  ;;  %p577_p1 = scmp.lt.s32.totalorder %s33_s12, %s33_s12 }
   0x6   :  { %p573_p0 = scmp.ne.s32.totalorder %s33_s12, %s572_s13  ;;  %p578_p2 = scmp.lt.s32.totalorder %s572_s13, %s572_s13 }
   0x8   :  { %p579_p3 = por %p578_p2, %p577_p1 }
   0xa   :  { %p580_p4 = pnand %p579_p3, %p573_p0 }
   0xc   :  { %583 = shalt.err (!%p580_p4)
}
   0xd   :  { %s587_s14 = smov 128   ;;  %s588_s15 = smov 8  }
   0xe   :  { %38 = dma.hbm_to_vmem [thread:$0]  %s681_s5, 4096, %s33_s12, [#allocation4], %s587_s14, %s587_s14, %s588_s15  }
   0xf   :  { %584 = dma.done.wait [#allocation4], 4096  }
  0x10   :  { %585 = vsyncadd [#allocation4], 4294963200  ;;  %v589_v1 = vmov 0   ;;  %v52_v2 = vld [vmem:[%s679_s3] sm:$0xff]  ;;  %vm62_vm0 = vcmask 1043456   ;;  %vm58_vm1 = vcmask 64512   ;;  %v167_v44 = vlaneseq }
  0x11   :  { %101 = vmatprep.mubr.bf16.mxu1 %v589_v1  ;;  %511 = vset.pattern.permute.xlu0 %v589_v1  ;;  %v50_v3 = vld [vmem:[%s678_s2] sm:$0xff]  ;;  %v467_v4 = vcombine.high %v52_v2, %v52_v2  ;;  %v466_v5 = vcombine.low %v52_v2, %v52_v2  ;;  %v518_v9 = vld [vmem:[#allocation3 + $0x70] ss:$8 sps:$4 sm:$0xff]  }
  0x12   :  { %v471_v6 = vcombine.high %v50_v3, %v50_v3  ;;  %v470_v7 = vcombine.low %v50_v3, %v50_v3  ;;  %v516_v8 = vld [vmem:[#allocation3 + $0x74] ss:$8 sps:$4 sm:$0xff]   ;;  %v519_v11 = vld [vmem:[#allocation3 + $0x64] ss:$8 sps:$4 sm:$0xff]   ;;  %v521_v14 = vld [vmem:[#allocation3 + $0x60] ss:$8 sps:$4 sm:$0xff]  }
  0x13   :  { %468 = vmatprep.subr.msk.bf16.mxu1 %vm62_vm0, %v467_v4  ;;  %v64_v10 = vsel %vm62_vm0, %v466_v5, 0  ;;  %v51_v12 = vld [vmem:[%s677_s1] sm:$0xf]  ;;  %387 = vmatprep.subr.bf16.mxu0 %v516_v8  ;;  %v524_v16 = vld [vmem:[#allocation3 + $0x50] ss:$8 sps:$4 sm:$0xff]   ;;  %v168_v45 = vshrl.u32 %v167_v44, 7 }
  0x14   :  { %84 = vmatpush1.bf16.msra.mxu1 %v64_v10  ;;  %v119_v13 = vsel %vm62_vm0, %v470_v7, 0  ;;  %388 = vmatpush1.bf16.msra.mxu0 %v518_v9  ;;  %v522_v15 = vld [vmem:[#allocation3 + $0x54] ss:$8 sps:$4 sm:$0xff]   ;;  %v525_v17 = vld [vmem:[#allocation3 + $0x44] ss:$8 sps:$4 sm:$0xff]  }
  0x15   :  { %472 = vmatprep.subr.msk.bf16.mxu1 %vm62_vm0, %v471_v6  ;;  %389 = vmatprep.subr.bf16.mxu0 %v519_v11  ;;  %v49_v18 = vld [vmem:[%s676_s0] sm:$0xf]  ;;  %v530_v21 = vld [vmem:[#allocation3 + $0x30] ss:$8 sps:$4 sm:$0xff]   ;;  %v531_v22 = vld [vmem:[#allocation3 + $0x24] ss:$8 sps:$4 sm:$0xff]  }
  0x16   :  { %v527_v19 = vld [vmem:[#allocation3 + $0x40] ss:$8 sps:$4 sm:$0xff]   ;;  %v528_v20 = vld [vmem:[#allocation3 + $0x34] ss:$8 sps:$4 sm:$0xff]   ;;  %v536_v25 = vld [vmem:[#allocation3 + $0x10] ss:$8 sps:$4 sm:$0xff]  }
  0x17   :  { %469 = vmatmul.mubr.msk.bf16.vlgmr.msra.gmra.mxu1 %vm58_vm1, %v51_v12  ;;  %v533_v23 = vld [vmem:[#allocation3 + $0x20] ss:$8 sps:$4 sm:$0xff]   ;;  %v534_v24 = vld [vmem:[#allocation3 + $0x14] ss:$8 sps:$4 sm:$0xff]   ;;  %v537_v26 = vld [vmem:[#allocation3 + $0x4] ss:$8 sps:$4 sm:$0xff]  }
  0x18   :  { %139 = vmatpush1.bf16.msra.mxu1 %v119_v13  ;;  %156 = vmatprep.mubr.bf16.mxu1 %v589_v1  ;;  %v539_v27 = vld [vmem:[#allocation3] ss:$8 sps:$4 sm:$0xff]   ;;  %v540_v28 = vld [vmem:[#allocation3 + $0xf4] ss:$8 sps:$4 sm:$0xff]   ;;  %v542_v29 = vld [vmem:[#allocation3 + $0xf0] ss:$8 sps:$4 sm:$0xff]  }
  0x19   :  { %390 = vmatpush1.bf16.msra.mxu0 %v521_v14  ;;  %v543_v30 = vld [vmem:[#allocation3 + $0xe4] ss:$8 sps:$4 sm:$0xff]   ;;  %v545_v31 = vld [vmem:[#allocation3 + $0xe0] ss:$8 sps:$4 sm:$0xff]   ;;  %v546_v32 = vld [vmem:[#allocation3 + $0xd4] ss:$8 sps:$4 sm:$0xff]  }
  0x1a   :  { %391 = vmatprep.subr.bf16.mxu0 %v522_v15  ;;  %v548_v33 = vld [vmem:[#allocation3 + $0xd0] ss:$8 sps:$4 sm:$0xff]   ;;  %v549_v34 = vld [vmem:[#allocation3 + $0xc4] ss:$8 sps:$4 sm:$0xff]   ;;  %v551_v35 = vld [vmem:[#allocation3 + $0xc0] ss:$8 sps:$4 sm:$0xff]  }
  0x1b   :  { %v552_v36 = vld [vmem:[#allocation3 + $0xb4] ss:$8 sps:$4 sm:$0xff]   ;;  %v554_v37 = vld [vmem:[#allocation3 + $0xb0] ss:$8 sps:$4 sm:$0xff]   ;;  %v555_v38 = vld [vmem:[#allocation3 + $0xa4] ss:$8 sps:$4 sm:$0xff]  }
  0x1c   :  { %v557_v39 = vld [vmem:[#allocation3 + $0xa0] ss:$8 sps:$4 sm:$0xff]   ;;  %v558_v40 = vld [vmem:[#allocation3 + $0x94] ss:$8 sps:$4 sm:$0xff]   ;;  %v560_v41 = vld [vmem:[#allocation3 + $0x90] ss:$8 sps:$4 sm:$0xff]  }
  0x1d   :  { %392 = vmatpush1.bf16.msra.mxu0 %v524_v16  ;;  %v561_v42 = vld [vmem:[#allocation3 + $0x84] ss:$8 sps:$4 sm:$0xff]   ;;  %v563_v43 = vld [vmem:[#allocation3 + $0x80] ss:$8 sps:$4 sm:$0xff]   ;;  %v169_v48 = vsub.s32 0, %v168_v45  ;;  %v173_v51 = vsub.s32 1, %v168_v45 }
  0x1e   :  { %393 = vmatprep.subr.bf16.mxu0 %v525_v17  ;;  %v165_v50 = vld [vmem:[%s680_s4] sm:$0x3] }
  0x1f   :  { %473 = vmatmul.mubr.msk.bf16.vlgmr.msra.gmra.mxu1 %vm58_vm1, %v49_v18  ;;  %v170_v53 = vrot.slane %v165_v50, %v169_v48  ;;  %v174_v56 = vrot.slane %v165_v50, %v173_v51  ;;  %v215_v3 = vld [vmem:[%s682_s6] sm:$0x3] }
  0x20   :  { %v220_v4 = vrot.slane %v215_v3, %v169_v48  ;;  %v224_v5 = vrot.slane %v215_v3, %v173_v51  ;;  %v430_v7 = vld [vmem:[%s683_s7] sm:$0x3] }
  0x21   :  { %394 = vmatpush1.bf16.msra.mxu0 %v527_v19  ;;  %v435_v12 = vrot.slane %v430_v7, %v169_v48  ;;  %v439_v13 = vrot.slane %v430_v7, %v173_v51 }
  0x22   :  { %395 = vmatprep.subr.bf16.mxu0 %v528_v20  ;;  %v506_v20 = vld [vmem:[#allocation2] ss:$0 sm:$0xff] }
  0x25   :  { %396 = vmatpush1.bf16.msra.mxu0 %v530_v21 }
  0x26   :  { %397 = vmatprep.subr.bf16.mxu0 %v531_v22 }
  0x29   :  { %398 = vmatpush1.bf16.msra.mxu0 %v533_v23 }
  0x2a   :  { %399 = vmatprep.subr.bf16.mxu0 %v534_v24 }
  0x2d   :  { %400 = vmatpush1.bf16.msra.mxu0 %v536_v25 }
  0x2e   :  { %401 = vmatprep.subr.bf16.mxu0 %v537_v26 }
  0x31   :  { %402 = vmatpush1.bf16.msra.mxu0 %v539_v27 }
  0x32   :  { %403 = vmatprep.subr.bf16.mxu0 %v540_v28 }
  0x35   :  { %404 = vmatpush2.bf16.msra.mxu0 %v542_v29 }
  0x36   :  { %405 = vmatprep.subr.bf16.mxu0 %v543_v30 }
  0x39   :  { %406 = vmatpush2.bf16.msra.mxu0 %v545_v31 }
  0x3a   :  { %407 = vmatprep.subr.bf16.mxu0 %v546_v32 }
  0x3d   :  { %408 = vmatpush2.bf16.msra.mxu0 %v548_v33 }
  0x3e   :  { %409 = vmatprep.subr.bf16.mxu0 %v549_v34 }
  0x41   :  { %410 = vmatpush2.bf16.msra.mxu0 %v551_v35 }
  0x42   :  { %411 = vmatprep.subr.bf16.mxu0 %v552_v36 }
  0x45   :  { %412 = vmatpush2.bf16.msra.mxu0 %v554_v37 }
  0x46   :  { %413 = vmatprep.subr.bf16.mxu0 %v555_v38 }
  0x49   :  { %414 = vmatpush2.bf16.msra.mxu0 %v557_v39 }
  0x4a   :  { %415 = vmatprep.subr.bf16.mxu0 %v558_v40 }
  0x4d   :  { %416 = vmatpush2.bf16.msra.mxu0 %v560_v41 }
  0x4e   :  { %417 = vmatprep.subr.bf16.mxu0 %v561_v42 }
  0x51   :  { %418 = vmatpush2.bf16.msra.mxu0 %v563_v43 }
  0xd7   :  { %v103_v46 = vpop.f32.mrf.mxu1 }
  0xd9   :  { %v105_v47 = vpop.f32.mrf.mxu1 }
  0xdb   :  { %v107_v49 = vpop.f32.mrf.mxu1 }
  0xdd   :  { %v108_v52 = vpop.f32.mrf.mxu1 }
  0xdf   :  { %v158_v54 = vpop.f32.mrf.mxu1 }
  0xe0   :  { %v159_v55 = vadd.f32 %v158_v54, %v103_v46 }
  0xe1   :  { %v160_v57 = vpop.f32.mrf.mxu1 }
  0xe2   :  { %v177_v58 = vadd.f32 %v170_v53, %v159_v55  ;;  %v161_v59 = vadd.f32 %v160_v57, %v105_v47 }
  0xe3   :  { %v162_v60 = vpop.f32.mrf.mxu1 }
  0xe4   :  { %v178_v61 = vadd.f32 %v174_v56, %v161_v59  ;;  %v179_v62 = vmax.f32 %v177_v58, 0.0 }
  0xe5   :  { %v163_v63 = vpop.f32.mrf.mxu1 }
  0xe6   :  { %v180_v0 = vmax.f32 %v178_v61, 0.0  ;;  %v181_v2 = vpack.c.bf16 %v179_v62, %v179_v62 }
  0xe8   :  { %v182_v1 = vpack.c.bf16 %v180_v0, %v180_v0 }
  0xea   :  { %419 = vmatprep.mubr.bf16.mxu0 %v182_v1 }
  0xeb   :  { %420 = vmatmul.mubr.bf16.vlgmr.msra.gmra.mxu0 %v181_v2 }
 0x1ab   :  { %v421_v6 = vpop.f32.mrf.mxu0 }
 0x1ac   :  { %v422_v8 = vadd.f32 %v421_v6, %v220_v4 }
 0x1ad   :  { %v423_v9 = vpop.f32.mrf.mxu0 }
 0x1ae   :  { %v428_v10 = vmax.f32 %v422_v8, 0.0  ;;  %v424_v11 = vadd.f32 %v423_v9, %v224_v5 }
 0x1af   :  { %v425_v14 = vpop.f32.mrf.mxu0 }
 0x1b0   :  { %v429_v15 = vmax.f32 %v424_v11, 0.0  ;;  %v442_v17 = vmul.f32 %v435_v12, %v428_v10 }
 0x1b1   :  { %v426_v16 = vpop.f32.mrf.mxu0 }
 0x1b2   :  { %v443_v18 = vmul.f32 %v439_v13, %v429_v15 }
 0x1b4   :  { %v444_v19 = vadd.f32 %v443_v18, %v442_v17 }
 0x1b6   :  { %445 = vadd.xlane.f32.xlu0 %v444_v19 }
 0x23f   :  { %v446_v21 = vpop.xlane.xlu0 %445 }
 0x240   :  { %v454_v22 = vadd.f32 %v506_v20, %v446_v21 }
 0x242   :  { %457 = vperm.xlu0 %511, %v454_v22  }
 0x2bd   :  { %v458_v23 = vpop.permute.xlu0 %457 }
 0x2be   :  { %460 = vst [vmem:[%s685_s9] sm:$0xff] %v458_v23 }
 0x2bf   :  { %465 = vsyncpa [#allocation4], 1 }

</bundles_post_ra>
